<compile_context>
chip_gen: v5e
topology: v5e:2x2
jax: 0.10.0
libtpu: 0.0.40
codegen_flags: <defaults>
</compile_context>

<pallas_src>
import jax
import jax.numpy as jnp
from jax.experimental import pallas as pl
from jax.experimental.pallas import tpu as pltpu

IN_FEATURES = 84
OUT_FEATURES = 64


def _round_up(n, m):
    return ((n + m - 1) // m) * m


def _proto_kernel(x_ref, w_ref, b_ref, o_ref):
    # x_ref: (TB, 84)  w_ref: (84, 64)  b_ref: (1, 64)  o_ref: (TB, 64)
    y = jnp.dot(x_ref[...], w_ref[...], preferred_element_type=jnp.float32)
    y = y + b_ref[...]                                     # broadcast (1, 64) over batch tile
    o_ref[...] = jnp.maximum(y, 0.0).astype(o_ref.dtype)   # ReLU; dropout = identity (eval)


def prototype_generator(x, w_t, b, *, block_b=1024):
    """x: (B, *) flattened to (B, 84); w_t: (84, 64); b: (64,). Returns (B, 64)."""
    B = x.shape[0]
    x2 = x.reshape(B, -1)                                  # x.view(x.size(0), -1)
    assert x2.shape[1] == IN_FEATURES, (
        f"expected {IN_FEATURES} flattened features, got {x2.shape[1]}")
    b2 = b.reshape(1, OUT_FEATURES)

    # Batch tile: multiple of 8 (sublane), capped at block_b rows
    # (1024 rows * 84 * 4B ~= 344 KiB per input buffer -> tiny VMEM even double-buffered).
    tb = min(block_b, _round_up(B, 8))
    b_pad = _round_up(B, tb)
    if b_pad != B:
        # Zero rows pass through Linear+ReLU harmlessly and are sliced off below.
        x2 = jnp.pad(x2, ((0, b_pad - B), (0, 0)))

    itemsize = jnp.dtype(x2.dtype).itemsize
    cost = pl.CostEstimate(
        flops=2 * b_pad * IN_FEATURES * OUT_FEATURES,
        transcendentals=0,
        bytes_accessed=itemsize * (b_pad * IN_FEATURES
                                   + IN_FEATURES * OUT_FEATURES
                                   + OUT_FEATURES
                                   + b_pad * OUT_FEATURES),
    )

    out = pl.pallas_call(
        _proto_kernel,
        out_shape=jax.ShapeDtypeStruct((b_pad, OUT_FEATURES), x2.dtype),
        grid_spec=pl.GridSpec(
            grid=(b_pad // tb,),
            in_specs=[
                pl.BlockSpec((tb, IN_FEATURES), lambda i: (i, 0)),            # batch tile
                pl.BlockSpec((IN_FEATURES, OUT_FEATURES), lambda i: (0, 0)),   # weight: resident
                pl.BlockSpec((1, OUT_FEATURES), lambda i: (0, 0)),             # bias:   resident
            ],
            out_specs=pl.BlockSpec((tb, OUT_FEATURES), lambda i: (i, 0)),
        ),
        compiler_params=pltpu.CompilerParams(
            dimension_semantics=("parallel",)),             # v7x: shard batch tiles across 2 TCs
        cost_estimate=cost,
    )(x2, w_t, b2)

    return out[:B] if b_pad != B else out


if __name__ == "__main__":
    key = jax.random.PRNGKey(0)
    kx, kw, kb, kx2 = jax.random.split(key, 4)

    # Deterministic parameters (PyTorch Linear(84, 64): W (64, 84), b (64,)).
    bound = 1.0 / (IN_FEATURES ** 0.5)
    w = jax.random.uniform(kw, (OUT_FEATURES, IN_FEATURES),
                           minval=-bound, maxval=bound, dtype=jnp.float32)
    b = jax.random.uniform(kb, (OUT_FEATURES,),
                           minval=-bound, maxval=bound, dtype=jnp.float32)
    w_t = w.T  # (84, 64) for the kernel

    # Case 1: aligned batch (B multiple of 8).
    B = 8
    x = jax.random.normal(kx, (B, IN_FEATURES), dtype=jnp.float32)
    out = jax.block_until_ready(prototype_generator(x, w_t, b))
    ref = jnp.maximum(x.reshape(B, -1) @ w.T + b, 0.0)
    assert out.shape == (B, OUT_FEATURES)
    assert jnp.allclose(out, ref, atol=1e-5, rtol=1e-5), "mismatch vs reference (B=8)"

    # Case 2: ragged batch (exercises pad-to-tile + slice-back path).
    B2 = 20
    x_r = jax.random.normal(kx2, (B2, IN_FEATURES), dtype=jnp.float32)
    out_r = jax.block_until_ready(prototype_generator(x_r, w_t, b))
    ref_r = jnp.maximum(x_r.reshape(B2, -1) @ w.T + b, 0.0)
    assert out_r.shape == (B2, OUT_FEATURES)
    assert jnp.allclose(out_r, ref_r, atol=1e-5, rtol=1e-5), "mismatch vs reference (B=20)"

    print("KERNEL_OK")
</pallas_src>

<mosaic_0001>
module attributes {stable_mosaic.version = 11 : i64} {
  func.func @_proto_kernel(%arg0: i32, %arg1: memref<8x84xf32, #tpu.memory_space<vmem>>, %arg2: memref<84x64xf32, #tpu.memory_space<vmem>>, %arg3: memref<1x64xf32, #tpu.memory_space<vmem>>, %arg4: memref<8x64xf32, #tpu.memory_space<vmem>>) attributes {dimension_semantics = [#tpu.dimension_semantics<parallel>], iteration_bounds = array<i64: 1>, scalar_prefetch = 0 : i64, scratch_operands = 0 : i64, tpu.core_type = #tpu.core_type<tc>, window_params = [{transform_indices = @transform_0, window_bounds = array<i64: 8, 84>}, {pipeline_mode = #tpu.pipeline_mode<synchronous>, transform_indices = @transform_1, window_bounds = array<i64: 84, 64>}, {pipeline_mode = #tpu.pipeline_mode<synchronous>, transform_indices = @transform_2, window_bounds = array<i64: 1, 64>}, {transform_indices = @transform_3, window_bounds = array<i64: 8, 64>}]} {
    %c0 = arith.constant 0 : index
    %c0_0 = arith.constant 0 : index
    %0 = vector.load %arg1[%c0, %c0_0] : memref<8x84xf32, #tpu.memory_space<vmem>>, vector<8x84xf32>
    %c0_1 = arith.constant 0 : index
    %c0_2 = arith.constant 0 : index
    %1 = vector.load %arg2[%c0_1, %c0_2] : memref<84x64xf32, #tpu.memory_space<vmem>>, vector<84x64xf32>
    %cst = arith.constant dense<0.000000e+00> : vector<8x64xf32>
    %2 = tpu.matmul %0, %1, %cst {dimension_numbers = #tpu.dot_dimension_numbers<[1], [0], [0], [1], [0, 0, 1, 1], [], []>} : vector<8x84xf32>, vector<84x64xf32>, vector<8x64xf32> -> vector<8x64xf32>
    %c0_3 = arith.constant 0 : index
    %c0_4 = arith.constant 0 : index
    %3 = vector.load %arg3[%c0_3, %c0_4] : memref<1x64xf32, #tpu.memory_space<vmem>>, vector<1x64xf32>
    %4 = vector.broadcast %3 : vector<1x64xf32> to vector<8x64xf32>
    %5 = arith.addf %2, %4 : vector<8x64xf32>
    %cst_5 = arith.constant 0.000000e+00 : f32
    %6 = vector.broadcast %cst_5 : f32 to vector<8x64xf32>
    %7 = arith.maximumf %5, %6 : vector<8x64xf32>
    %c0_6 = arith.constant 0 : index
    %c0_7 = arith.constant 0 : index
    %8 = vector.load %arg4[%c0_6, %c0_7] : memref<8x64xf32, #tpu.memory_space<vmem>>, vector<8x64xf32>
    tpu.vector_store %arg4[%c0_6, %c0_7], %7 {strides = array<i32>} : memref<8x64xf32, #tpu.memory_space<vmem>>, vector<8x64xf32>,
    return
  }
  func.func @transform_0(%arg0: i32) -> (i32, i32) {
    %c0_i32 = arith.constant 0 : i32
    %c0_i32_0 = arith.constant 0 : i32
    return %arg0, %c0_i32 : i32, i32
  }
  func.func @transform_1(%arg0: i32) -> (i32, i32) {
    %c0_i32 = arith.constant 0 : i32
    %c0_i32_0 = arith.constant 0 : i32
    %c0_i32_1 = arith.constant 0 : i32
    return %c0_i32, %c0_i32_0 : i32, i32
  }
  func.func @transform_2(%arg0: i32) -> (i32, i32) {
    %c0_i32 = arith.constant 0 : i32
    %c0_i32_0 = arith.constant 0 : i32
    %c0_i32_1 = arith.constant 0 : i32
    return %c0_i32, %c0_i32_0 : i32, i32
  }
  func.func @transform_3(%arg0: i32) -> (i32, i32) {
    %c0_i32 = arith.constant 0 : i32
    %c0_i32_0 = arith.constant 0 : i32
    return %arg0, %c0_i32 : i32, i32
  }
}

</mosaic_0001>

<bundles_post_ra>
// kernel: tpu_custom_call.1
= control target key start
LH: loop header
LB: loop body
LE: loop exit
PB: predicated region body
PF: predicated region fallthrough
CT: control target
= control target key end

     0   :  { %vm35_vm0 = vcmask 1043456   ;;  %s171_s0 = inlined_call_operand.vmem [shape: f32[8,84], index: 0, kind: input, shape index: {}]   ;;  %s172_s1 = inlined_call_operand.vmem [shape: f32[84,64], index: 1, kind: input, shape index: {}]   ;;  %s173_s2 = inlined_call_operand.vmem [shape: f32[1,64], index: 2, kind: input, shape index: {}]   ;;  %s174_s3 = inlined_call_operand.hbm [shape: f32[8,64], index: 3, kind: output, shape index: {}]  }
   0x1   :  { %v26_v0 = vld [vmem:[%s172_s1 + $0x50] sm:$0xf]  ;;  %v25_v1 = vld [vmem:[%s172_s1 + $0x48] sm:$0xff]  ;;  %v24_v2 = vld [vmem:[%s172_s1 + $0x40] sm:$0xff] }
   0x2   :  { %78 = vmatpush.msk.msra.mxu0 %vm35_vm0, %v26_v0  ;;  %v23_v3 = vld [vmem:[%s172_s1 + $0x38] sm:$0xff] }
   0x4   :  { %45 = vmatpush.msra.mxu0 %v25_v1 }
   0x5   :  { %8 = vsyncpa [#allocation3], 0  ;;  %v22_v4 = vld [vmem:[%s172_s1 + $0x30] sm:$0xff]  ;;  %v21_v5 = vld [vmem:[%s172_s1 + $0x28] sm:$0xff]  ;;  %vm31_vm1 = vcmask 687104   ;;  %s108_s11 = smov [#allocation2]  }
   0x6   :  { %46 = vmatpush.msra.mxu0 %v24_v2  ;;  %v20_v6 = vld [vmem:[%s172_s1 + $0x20] sm:$0xff]  ;;  %v19_v7 = vld [vmem:[%s172_s1 + $0x18] sm:$0xff]  ;;  %v18_v8 = vld [vmem:[%s172_s1 + $0x10] sm:$0xff]  ;;  %s67_s12 = sshll.u32 %s108_s11, 4  ;;  %s69_s15 = sshll.u32 %s174_s3, 4  ;;  %vm60_vm2 = vcmask 523264   ;;  %s68_s12 = int_to_ptr.vmem [resolvable:$true] %s67_s12  ;;  %s70_s15 = int_to_ptr.hbm [resolvable:$true] %s69_s15 }
   0x7   :  { %v17_v9 = vld [vmem:[%s172_s1 + $0x8] sm:$0xff]  ;;  %v16_v10 = vld [vmem:[%s172_s1] sm:$0xff] }
   0x8   :  { %47 = vmatpush.msra.mxu0 %v23_v3  ;;  %v15_v11 = vld [vmem:[%s171_s0] sm:$0xff] }
   0x9   :  { %v81_v12 = vld [vmem:[%s173_s2] ss:$0 sm:$0xff] }
   0xa   :  { %48 = vmatpush.msra.mxu0 %v22_v4 }
   0xc   :  { %49 = vmatpush.msra.mxu0 %v21_v5 }
   0xe   :  { %50 = vmatpush.msra.mxu0 %v20_v6 }
  0x10   :  { %51 = vmatpush.msra.mxu0 %v19_v7 }
  0x12   :  { %52 = vmatpush.msra.mxu0 %v18_v8 }
  0x14   :  { %53 = vmatpush.msra.mxu0 %v17_v9 }
  0x16   :  { %54 = vmatpush.msra.mxu0 %v16_v10 }
  0x17   :  { %79 = vmatmul.msk.f32.vlgmr.msra.gmra.mxu0 %vm31_vm1, %v15_v11 }
  0x94   :  { %v56_v13 = vpop.f32.mrf.mxu0 }
  0x95   :  { %v57_v14 = vadd.f32 %v81_v12, %v56_v13 }
  0x97   :  { %v59_v15 = vmax.f32 %v57_v14, 0.0 }
  0x99   :  { %61 = vst.msk [vmem:[#allocation2] sm:$0xff] %vm60_vm2, %v59_v15 }
  0x9a   :  { %72 = dma.vmem_to_hbm [thread:$0]  %s68_s12, 128, %s70_s15, [#allocation3]  }
  0x9b   :  { %106 = dma.done.wait [#allocation3], 128  }
  0x9c   :  { %107 = vsyncadd [#allocation3], 4294967168 }
  0x9d   :  { %77 = vsyncpa [#allocation3], 1 }

</bundles_post_ra>
